<compile_context>
chip_gen: v7x
topology: tpu7x:2x2x1
jax: 0.10.0
libtpu: 0.0.40
codegen_flags: <defaults>
</compile_context>

<pallas_src>
import functools

import jax
import jax.numpy as jnp
from jax.experimental import pallas as pl
from jax.experimental.pallas import tpu as pltpu


def _round_up(x, m):
    return ((x + m - 1) // m) * m


def _triplet_embed_kernel(a_ref, p_ref, n_ref, w1_ref, b1_ref, w2_ref, b2_ref,
                          ao_ref, po_ref, no_ref):
    # a/p/n: (tm, d_in) bf16       w1: (d_in, hidden) bf16   b1: (1, hidden) f32
    # w2: (hidden, e_pad) bf16     b2: (1, e_pad) f32
    # ao/po/no: (tm, e_pad) f32 (lane-dense, unmasked stores)
    w1 = w1_ref[...]
    b1 = b1_ref[...]
    w2 = w2_ref[...]
    b2 = b2_ref[...]

    def embed(x):
        # f32 accumulation on the MXU; bias + ReLU in f32 (no bf16 VALU on v5e).
        h = jnp.dot(x, w1, preferred_element_type=jnp.float32) + b1
        h = jnp.maximum(h, 0.0).astype(jnp.bfloat16)
        return jnp.dot(h, w2, preferred_element_type=jnp.float32) + b2

    ao_ref[...] = embed(a_ref[...])
    po_ref[...] = embed(p_ref[...])
    no_ref[...] = embed(n_ref[...])


def prepare_params(params):
    """One-time parameter prep, hoisted out of the forward hot path."""
    w1, b1, w2, b2 = params
    d_in, hidden = w1.shape
    embed = w2.shape[1]
    e_pad = _round_up(embed, 128)                       # lane-dense output dim

    w1_bf = w1.astype(jnp.bfloat16)
    w2_bf = jnp.zeros((hidden, e_pad), jnp.bfloat16).at[:, :embed].set(
        w2.astype(jnp.bfloat16))
    b1_2d = b1.reshape(1, hidden).astype(jnp.float32)
    b2_2d = jnp.zeros((1, e_pad), jnp.float32).at[0, :embed].set(
        b2.astype(jnp.float32))
    return (w1_bf, b1_2d, w2_bf, b2_2d), embed


def triplet_net_forward(anchor, pos, neg, prepared, embed):
    """Returns (anchor_embedding, pos_embedding, neg_embedding)."""
    w1_bf, b1_2d, w2_bf, b2_2d = prepared
    B, d_in = anchor.shape
    hidden = w1_bf.shape[1]
    e_pad = w2_bf.shape[1]

    # ---- batch tiling ------------------------------------------------------
    # M tile target 256 matches v6e/v7x MXU granularity; small batches run as
    # a single tile.  Round to 16 rows for bf16 sublane packing.
    TM_TARGET = 256
    b_round = _round_up(B, 16)
    if b_round <= TM_TARGET:
        tm = b_round
        b_pad = b_round
    else:
        tm = TM_TARGET
        b_pad = _round_up(B, tm)
    num_m = b_pad // tm

    def prep_input(x):
        x = x.astype(jnp.bfloat16)          # halve activation HBM->VMEM bytes
        if b_pad != B:
            x = jnp.pad(x, ((0, b_pad - B), (0, 0)))
        return x

    a_bf, p_bf, n_bf = prep_input(anchor), prep_input(pos), prep_input(neg)

    act_spec = pl.BlockSpec((tm, d_in), lambda i: (i, 0))
    out_spec = pl.BlockSpec((tm, e_pad), lambda i: (i, 0))

    def resident(shape):                    # weights stay in VMEM across tiles
        return pl.BlockSpec(shape, lambda i: (0, 0))

    # ---- VMEM budget (double-buffered by the pipeliner) --------------------
    bytes_weights = (w1_bf.size + w2_bf.size) * 2 + (b1_2d.size + b2_2d.size) * 4
    bytes_acts = 3 * tm * d_in * 2
    bytes_outs = 3 * tm * e_pad * 4
    bytes_h = 3 * tm * hidden * 4
    vmem_needed = 2 * (bytes_weights + bytes_acts + bytes_outs) + bytes_h
    vmem_limit = int(min(64 * 2**20, max(4 * 2**20, 4 * vmem_needed)))

    flops = 2 * 3 * b_pad * (d_in * hidden + hidden * e_pad)
    bytes_accessed = (3 * b_pad * d_in * 2 + 3 * b_pad * e_pad * 4
                      + num_m * bytes_weights)

    out_shape = jax.ShapeDtypeStruct((b_pad, e_pad), jnp.float32)

    a_emb, p_emb, n_emb = pl.pallas_call(
        _triplet_embed_kernel,
        out_shape=(out_shape, out_shape, out_shape),
        grid=(num_m,),
        in_specs=[act_spec, act_spec, act_spec,
                  resident((d_in, hidden)), resident((1, hidden)),
                  resident((hidden, e_pad)), resident((1, e_pad))],
        out_specs=(out_spec, out_spec, out_spec),
        compiler_params=pltpu.CompilerParams(
            dimension_semantics=("parallel",),     # shard tiles across TCs (v7x)
            vmem_limit_bytes=vmem_limit),
        cost_estimate=pl.CostEstimate(
            flops=flops, transcendentals=0, bytes_accessed=bytes_accessed),
    )(a_bf, p_bf, n_bf, w1_bf, b1_2d, w2_bf, b2_2d)

    def crop(y):
        if b_pad == B and e_pad == embed:
            return y                        # no wrapper slice when unpadded
        return y[:B, :embed]

    return crop(a_emb), crop(p_emb), crop(n_emb)


def init_params(key, d_in, hidden, embed):
    """Deterministic synthetic parameters for the embedding MLP."""
    k1, k2, k3, k4 = jax.random.split(key, 4)
    w1 = jax.random.normal(k1, (d_in, hidden), jnp.float32) * (1.0 / jnp.sqrt(d_in))
    b1 = jax.random.normal(k2, (hidden,), jnp.float32) * 0.01
    w2 = jax.random.normal(k3, (hidden, embed), jnp.float32) * (1.0 / jnp.sqrt(hidden))
    b2 = jax.random.normal(k4, (embed,), jnp.float32) * 0.01
    return w1, b1, w2, b2


if __name__ == "__main__":
    key = jax.random.PRNGKey(0)
    B, D_IN, HIDDEN, EMBED = 8, 32, 64, 16

    kp, ka, kb, kc = jax.random.split(key, 4)
    params = init_params(kp, D_IN, HIDDEN, EMBED)
    prepared, embed = prepare_params(params)        # one-time weight prep

    anchor = jax.random.normal(ka, (B, D_IN), jnp.float32)
    pos = jax.random.normal(kb, (B, D_IN), jnp.float32)
    neg = jax.random.normal(kc, (B, D_IN), jnp.float32)

    fwd = jax.jit(triplet_net_forward, static_argnums=(4,))
    a_emb, p_emb, n_emb = fwd(anchor, pos, neg, prepared, embed)
    jax.block_until_ready((a_emb, p_emb, n_emb))

    # Pure-JAX reference with the same bf16-operand / f32-accumulate numerics.
    def ref_embed(x):
        w1, b1, w2, b2 = params
        h = jnp.dot(x.astype(jnp.bfloat16), w1.astype(jnp.bfloat16),
                    preferred_element_type=jnp.float32) + b1
        h = jnp.maximum(h, 0.0).astype(jnp.bfloat16)
        return jnp.dot(h, w2.astype(jnp.bfloat16),
                       preferred_element_type=jnp.float32) + b2

    for got, x in ((a_emb, anchor), (p_emb, pos), (n_emb, neg)):
        ref = ref_embed(x)
        assert got.shape == (B, EMBED)
        assert jnp.allclose(got, ref, atol=2e-2, rtol=2e-2)

    print("KERNEL_OK")
</pallas_src>

<mosaic_0001>
module attributes {stable_mosaic.version = 11 : i64} {
  func.func @_triplet_embed_kernel(%arg0: i32, %arg1: memref<16x32xbf16, #tpu.memory_space<vmem>>, %arg2: memref<16x32xbf16, #tpu.memory_space<vmem>>, %arg3: memref<16x32xbf16, #tpu.memory_space<vmem>>, %arg4: memref<32x64xbf16, #tpu.memory_space<vmem>>, %arg5: memref<1x64xf32, #tpu.memory_space<vmem>>, %arg6: memref<64x128xbf16, #tpu.memory_space<vmem>>, %arg7: memref<1x128xf32, #tpu.memory_space<vmem>>, %arg8: memref<16x128xf32, #tpu.memory_space<vmem>>, %arg9: memref<16x128xf32, #tpu.memory_space<vmem>>, %arg10: memref<16x128xf32, #tpu.memory_space<vmem>>) attributes {dimension_semantics = [#tpu.dimension_semantics<parallel>], iteration_bounds = array<i64: 1>, scalar_prefetch = 0 : i64, scratch_operands = 0 : i64, tpu.core_type = #tpu.core_type<tc>, window_params = [{transform_indices = @transform_0, window_bounds = array<i64: 16, 32>}, {transform_indices = @transform_1, window_bounds = array<i64: 16, 32>}, {transform_indices = @transform_2, window_bounds = array<i64: 16, 32>}, {pipeline_mode = #tpu.pipeline_mode<synchronous>, transform_indices = @transform_3, window_bounds = array<i64: 32, 64>}, {pipeline_mode = #tpu.pipeline_mode<synchronous>, transform_indices = @transform_4, window_bounds = array<i64: 1, 64>}, {pipeline_mode = #tpu.pipeline_mode<synchronous>, transform_indices = @transform_5, window_bounds = array<i64: 64, 128>}, {pipeline_mode = #tpu.pipeline_mode<synchronous>, transform_indices = @transform_6, window_bounds = array<i64: 1, 128>}, {transform_indices = @transform_7, window_bounds = array<i64: 16, 128>}, {transform_indices = @transform_8, window_bounds = array<i64: 16, 128>}, {transform_indices = @transform_9, window_bounds = array<i64: 16, 128>}]} {
    %c0 = arith.constant 0 : index
    %c0_0 = arith.constant 0 : index
    %0 = vector.load %arg4[%c0, %c0_0] : memref<32x64xbf16, #tpu.memory_space<vmem>>, vector<32x64xbf16>
    %c0_1 = arith.constant 0 : index
    %c0_2 = arith.constant 0 : index
    %1 = vector.load %arg5[%c0_1, %c0_2] : memref<1x64xf32, #tpu.memory_space<vmem>>, vector<1x64xf32>
    %c0_3 = arith.constant 0 : index
    %c0_4 = arith.constant 0 : index
    %2 = vector.load %arg6[%c0_3, %c0_4] : memref<64x128xbf16, #tpu.memory_space<vmem>>, vector<64x128xbf16>
    %c0_5 = arith.constant 0 : index
    %c0_6 = arith.constant 0 : index
    %3 = vector.load %arg7[%c0_5, %c0_6] : memref<1x128xf32, #tpu.memory_space<vmem>>, vector<1x128xf32>
    %c0_7 = arith.constant 0 : index
    %c0_8 = arith.constant 0 : index
    %4 = vector.load %arg1[%c0_7, %c0_8] : memref<16x32xbf16, #tpu.memory_space<vmem>>, vector<16x32xbf16>
    %cst = arith.constant dense<0.000000e+00> : vector<16x64xf32>
    %5 = tpu.matmul %4, %0, %cst {dimension_numbers = #tpu.dot_dimension_numbers<[1], [0], [0], [1], [0, 0, 1, 1], [], []>} : vector<16x32xbf16>, vector<32x64xbf16>, vector<16x64xf32> -> vector<16x64xf32>
    %6 = vector.broadcast %1 : vector<1x64xf32> to vector<16x64xf32>
    %7 = arith.addf %5, %6 : vector<16x64xf32>
    %cst_9 = arith.constant 0.000000e+00 : f32
    %8 = vector.broadcast %cst_9 : f32 to vector<16x64xf32>
    %9 = arith.maximumf %7, %8 : vector<16x64xf32>
    %10 = arith.truncf %9 : vector<16x64xf32> to vector<16x64xbf16>
    %cst_10 = arith.constant dense<0.000000e+00> : vector<16x128xf32>
    %11 = tpu.matmul %10, %2, %cst_10 {dimension_numbers = #tpu.dot_dimension_numbers<[1], [0], [0], [1], [0, 0, 1, 1], [], []>} : vector<16x64xbf16>, vector<64x128xbf16>, vector<16x128xf32> -> vector<16x128xf32>
    %12 = vector.broadcast %3 : vector<1x128xf32> to vector<16x128xf32>
    %13 = arith.addf %11, %12 : vector<16x128xf32>
    %c0_11 = arith.constant 0 : index
    %c0_12 = arith.constant 0 : index
    %14 = vector.load %arg8[%c0_11, %c0_12] : memref<16x128xf32, #tpu.memory_space<vmem>>, vector<16x128xf32>
    tpu.vector_store %arg8[%c0_11, %c0_12], %13 {strides = array<i32>} : memref<16x128xf32, #tpu.memory_space<vmem>>, vector<16x128xf32>,
    %c0_13 = arith.constant 0 : index
    %c0_14 = arith.constant 0 : index
    %15 = vector.load %arg2[%c0_13, %c0_14] : memref<16x32xbf16, #tpu.memory_space<vmem>>, vector<16x32xbf16>
    %cst_15 = arith.constant dense<0.000000e+00> : vector<16x64xf32>
    %16 = tpu.matmul %15, %0, %cst_15 {dimension_numbers = #tpu.dot_dimension_numbers<[1], [0], [0], [1], [0, 0, 1, 1], [], []>} : vector<16x32xbf16>, vector<32x64xbf16>, vector<16x64xf32> -> vector<16x64xf32>
    %17 = vector.broadcast %1 : vector<1x64xf32> to vector<16x64xf32>
    %18 = arith.addf %16, %17 : vector<16x64xf32>
    %cst_16 = arith.constant 0.000000e+00 : f32
    %19 = vector.broadcast %cst_16 : f32 to vector<16x64xf32>
    %20 = arith.maximumf %18, %19 : vector<16x64xf32>
    %21 = arith.truncf %20 : vector<16x64xf32> to vector<16x64xbf16>
    %cst_17 = arith.constant dense<0.000000e+00> : vector<16x128xf32>
    %22 = tpu.matmul %21, %2, %cst_17 {dimension_numbers = #tpu.dot_dimension_numbers<[1], [0], [0], [1], [0, 0, 1, 1], [], []>} : vector<16x64xbf16>, vector<64x128xbf16>, vector<16x128xf32> -> vector<16x128xf32>
    %23 = vector.broadcast %3 : vector<1x128xf32> to vector<16x128xf32>
    %24 = arith.addf %22, %23 : vector<16x128xf32>
    %c0_18 = arith.constant 0 : index
    %c0_19 = arith.constant 0 : index
    %25 = vector.load %arg9[%c0_18, %c0_19] : memref<16x128xf32, #tpu.memory_space<vmem>>, vector<16x128xf32>
    tpu.vector_store %arg9[%c0_18, %c0_19], %24 {strides = array<i32>} : memref<16x128xf32, #tpu.memory_space<vmem>>, vector<16x128xf32>,
    %c0_20 = arith.constant 0 : index
    %c0_21 = arith.constant 0 : index
    %26 = vector.load %arg3[%c0_20, %c0_21] : memref<16x32xbf16, #tpu.memory_space<vmem>>, vector<16x32xbf16>
    %cst_22 = arith.constant dense<0.000000e+00> : vector<16x64xf32>
    %27 = tpu.matmul %26, %0, %cst_22 {dimension_numbers = #tpu.dot_dimension_numbers<[1], [0], [0], [1], [0, 0, 1, 1], [], []>} : vector<16x32xbf16>, vector<32x64xbf16>, vector<16x64xf32> -> vector<16x64xf32>
    %28 = vector.broadcast %1 : vector<1x64xf32> to vector<16x64xf32>
    %29 = arith.addf %27, %28 : vector<16x64xf32>
    %cst_23 = arith.constant 0.000000e+00 : f32
    %30 = vector.broadcast %cst_23 : f32 to vector<16x64xf32>
    %31 = arith.maximumf %29, %30 : vector<16x64xf32>
    %32 = arith.truncf %31 : vector<16x64xf32> to vector<16x64xbf16>
    %cst_24 = arith.constant dense<0.000000e+00> : vector<16x128xf32>
    %33 = tpu.matmul %32, %2, %cst_24 {dimension_numbers = #tpu.dot_dimension_numbers<[1], [0], [0], [1], [0, 0, 1, 1], [], []>} : vector<16x64xbf16>, vector<64x128xbf16>, vector<16x128xf32> -> vector<16x128xf32>
    %34 = vector.broadcast %3 : vector<1x128xf32> to vector<16x128xf32>
    %35 = arith.addf %33, %34 : vector<16x128xf32>
    %c0_25 = arith.constant 0 : index
    %c0_26 = arith.constant 0 : index
    %36 = vector.load %arg10[%c0_25, %c0_26] : memref<16x128xf32, #tpu.memory_space<vmem>>, vector<16x128xf32>
    tpu.vector_store %arg10[%c0_25, %c0_26], %35 {strides = array<i32>} : memref<16x128xf32, #tpu.memory_space<vmem>>, vector<16x128xf32>,
    return
  }
  func.func @transform_0(%arg0: i32) -> (i32, i32) {
    %c0_i32 = arith.constant 0 : i32
    %c0_i32_0 = arith.constant 0 : i32
    return %arg0, %c0_i32 : i32, i32
  }
  func.func @transform_1(%arg0: i32) -> (i32, i32) {
    %c0_i32 = arith.constant 0 : i32
    %c0_i32_0 = arith.constant 0 : i32
    return %arg0, %c0_i32 : i32, i32
  }
  func.func @transform_2(%arg0: i32) -> (i32, i32) {
    %c0_i32 = arith.constant 0 : i32
    %c0_i32_0 = arith.constant 0 : i32
    return %arg0, %c0_i32 : i32, i32
  }
  func.func @transform_3(%arg0: i32) -> (i32, i32) {
    %c0_i32 = arith.constant 0 : i32
    %c0_i32_0 = arith.constant 0 : i32
    %c0_i32_1 = arith.constant 0 : i32
    return %c0_i32, %c0_i32_0 : i32, i32
  }
  func.func @transform_4(%arg0: i32) -> (i32, i32) {
    %c0_i32 = arith.constant 0 : i32
    %c0_i32_0 = arith.constant 0 : i32
    %c0_i32_1 = arith.constant 0 : i32
    return %c0_i32, %c0_i32_0 : i32, i32
  }
  func.func @transform_5(%arg0: i32) -> (i32, i32) {
    %c0_i32 = arith.constant 0 : i32
    %c0_i32_0 = arith.constant 0 : i32
    %c0_i32_1 = arith.constant 0 : i32
    return %c0_i32, %c0_i32_0 : i32, i32
  }
  func.func @transform_6(%arg0: i32) -> (i32, i32) {
    %c0_i32 = arith.constant 0 : i32
    %c0_i32_0 = arith.constant 0 : i32
    %c0_i32_1 = arith.constant 0 : i32
    return %c0_i32, %c0_i32_0 : i32, i32
  }
  func.func @transform_7(%arg0: i32) -> (i32, i32) {
    %c0_i32 = arith.constant 0 : i32
    %c0_i32_0 = arith.constant 0 : i32
    return %arg0, %c0_i32 : i32, i32
  }
  func.func @transform_8(%arg0: i32) -> (i32, i32) {
    %c0_i32 = arith.constant 0 : i32
    %c0_i32_0 = arith.constant 0 : i32
    return %arg0, %c0_i32 : i32, i32
  }
  func.func @transform_9(%arg0: i32) -> (i32, i32) {
    %c0_i32 = arith.constant 0 : i32
    %c0_i32_0 = arith.constant 0 : i32
    return %arg0, %c0_i32 : i32, i32
  }
}

</mosaic_0001>

<bundles_post_ra>
// kernel: triplet_net_forward.1
= control target key start
LH: loop header
LB: loop body
LE: loop exit
PB: predicated region body
PF: predicated region fallthrough
CT: control target
= control target key end

     0   :  { %v518_v0 = vmov 0.0   ;;  %vm519_vm0 = vmmov 0   ;;  %vm69_vm1 = vcmask 261120   ;;  %vm147_vm2 = vcmask 523264   ;;  %s657_s3 = inlined_call_operand.vmem [shape: bf16[32,64], index: 3, kind: input, shape index: {}]   ;;  %s658_s5 = inlined_call_operand.vmem [shape: bf16[64,128], index: 5, kind: input, shape index: {}]   ;;  %s659_s0 = inlined_call_operand.vmem [shape: bf16[16,32], index: 0, kind: input, shape index: {}]   ;;  %s660_s1 = inlined_call_operand.vmem [shape: bf16[16,32], index: 1, kind: input, shape index: {}]   ;;  %s661_s2 = inlined_call_operand.vmem [shape: bf16[16,32], index: 2, kind: input, shape index: {}]   ;;  %s662_s4 = inlined_call_operand.vmem [shape: f32[1,64], index: 4, kind: input, shape index: {}]   ;;  %s663_s6 = inlined_call_operand.vmem [shape: f32[1,128], index: 6, kind: input, shape index: {}]   ;;  %s664_s7 = inlined_call_operand.vmem [shape: f32[16,128], index: 7, kind: output, shape index: {0}]   ;;  %s665_s8 = inlined_call_operand.vmem [shape: f32[16,128], index: 8, kind: output, shape index: {1}]   ;;  %s666_s9 = inlined_call_operand.vmem [shape: f32[16,128], index: 9, kind: output, shape index: {2}]  }
   0x1   :  { %447 = vmatprep.subr.bf16.mxu0 %v518_v0  ;;  %v509_v1 = vld [vmem:[%s657_s3] sm:$0xff]   ;;  %451 = vmatprep.mubr.msk.bf16.mxu0 %vm519_vm0, %v518_v0  ;;  %v510_v2 = vld [vmem:[%s657_s3 + $0x8] sm:$0xff]   ;;  %v514_v6 = vld [vmem:[%s658_s5 + $0x10] sm:$0xff]  }
   0x2   :  { %455 = vmatprep.subr.bf16.mxu1 %v518_v0  ;;  %463 = vmatprep.mubr.msk.bf16.mxu1 %vm519_vm0, %v518_v0  ;;  %v512_v3 = vld [vmem:[%s658_s5] sm:$0xff]   ;;  %v513_v5 = vld [vmem:[%s658_s5 + $0x8] sm:$0xff]   ;;  %v515_v7 = vld [vmem:[%s658_s5 + $0x18] sm:$0xff]  }
   0x3   :  { %448 = vmatpush3.bf16.msra.mxu0 %v509_v1  ;;  %v511_v4 = vld [vmem:[%s659_s0] sm:$0xff]   ;;  %456 = vmatpush3.bf16.msra.mxu1 %v512_v3 }
   0x4   :  { %449 = vmatprep.subr.bf16.mxu0 %v518_v0  ;;  %457 = vmatprep.subr.bf16.mxu1 %v518_v0  ;;  %v516_v8 = vld [vmem:[%s660_s1] sm:$0xff]  }
   0x5   :  { %v406_v9 = vld [vmem:[%s662_s4] ss:$0 sm:$0xff] }
   0x6   :  { %v517_v19 = vld [vmem:[%s661_s2] sm:$0xff]  }
   0x7   :  { %450 = vmatpush3.bf16.msra.mxu0 %v510_v2  ;;  %458 = vmatpush3.bf16.msra.mxu1 %v513_v5  ;;  %v411_v29 = vld [vmem:[%s663_s6] ss:$0 sm:$0xff] }
   0x8   :  { %467 = vmatprep.subr.bf16.mxu0 %v518_v0  ;;  %459 = vmatprep.subr.bf16.mxu1 %v518_v0 }
   0xa   :  { %452 = vmatmul.mubr.msk.bf16.vlgmr.msra.gmra.mrb[0].mxu0 %vm69_vm1, %v511_v4 }
   0xb   :  { %468 = vmatpush3.bf16.msra.mxu0 %v509_v1  ;;  %471 = vmatprep.mubr.msk.bf16.mxu0 %vm519_vm0, %v518_v0 }
   0xc   :  { %469 = vmatprep.subr.bf16.mxu0 %v518_v0  ;;  %460 = vmatpush3.bf16.msra.mxu1 %v514_v6 }
   0xd   :  { %461 = vmatprep.subr.bf16.mxu1 %v518_v0 }
   0xf   :  { %470 = vmatpush3.bf16.msra.mxu0 %v510_v2 }
  0x10   :  { %475 = vmatprep.subr.bf16.mxu0 %v518_v0  ;;  %462 = vmatpush3.bf16.msra.mxu1 %v515_v7 }
  0x11   :  { %487 = vmatprep.subr.bf16.mxu1 %v518_v0 }
  0x12   :  { %472 = vmatmul.mubr.msk.bf16.vlgmr.msra.gmra.mrb[4].mxu0 %vm69_vm1, %v516_v8 }
  0x13   :  { %476 = vmatpush3.bf16.msra.mxu0 %v512_v3  ;;  %483 = vmatprep.mubr.msk.bf16.mxu0 %vm519_vm0, %v518_v0 }
  0x14   :  { %477 = vmatprep.subr.bf16.mxu0 %v518_v0 }
  0x17   :  { %478 = vmatpush3.bf16.msra.mxu0 %v513_v5 }
  0x18   :  { %479 = vmatprep.subr.bf16.mxu0 %v518_v0 }
  0x1b   :  { %480 = vmatpush3.bf16.msra.mxu0 %v514_v6 }
  0x1c   :  { %481 = vmatprep.subr.bf16.mxu0 %v518_v0 }
  0x1f   :  { %482 = vmatpush3.bf16.msra.mxu0 %v515_v7 }
  0xdd   :  { %v107_v10 = vpop.f32.mrb[0].mxu0 }
  0xde   :  { %v108_v11 = vadd.f32 %v406_v9, %v107_v10  ;;  %v453_v12 = vpop.f32.mrb[1].mxu0 }
  0xdf   :  { %v110_v13 = vpop.f32.mrb[2].mxu0 }
  0xe0   :  { %v111_v14 = vadd.f32 %v406_v9, %v110_v13  ;;  %v454_v15 = vpop.f32.mrb[3].mxu0  ;;  %v114_v16 = vmax.f32 %v108_v11, 0.0 }
  0xe2   :  { %v115_v17 = vmax.f32 %v111_v14, 0.0 }
  0xe4   :  { %v116_v18 = vpack.c.bf16 %v115_v17, %v114_v16 }
  0xe5   :  { %v238_v20 = vpop.f32.mrb[4].mxu0 }
  0xe6   :  { %464 = vmatmul.mubr.msk.bf16.vlgmr.msra.gmra.mrb[0].mxu1 %vm147_vm2, %v116_v18  ;;  %v473_v21 = vpop.f32.mrb[5].mxu0  ;;  %v239_v22 = vadd.f32 %v406_v9, %v238_v20 }
  0xe7   :  { %488 = vmatpush3.bf16.msra.mxu1 %v509_v1  ;;  %491 = vmatprep.mubr.msk.bf16.mxu1 %vm519_vm0, %v518_v0  ;;  %v241_v23 = vpop.f32.mrb[6].mxu0 }
  0xe8   :  { %489 = vmatprep.subr.bf16.mxu1 %v518_v0  ;;  %v242_v24 = vadd.f32 %v406_v9, %v241_v23  ;;  %v474_v25 = vpop.f32.mrb[7].mxu0  ;;  %v245_v26 = vmax.f32 %v239_v22, 0.0 }
  0xea   :  { %v246_v27 = vmax.f32 %v242_v24, 0.0 }
  0xeb   :  { %490 = vmatpush3.bf16.msra.mxu1 %v510_v2 }
  0xec   :  { %495 = vmatprep.subr.bf16.mxu1 %v518_v0  ;;  %v247_v28 = vpack.c.bf16 %v246_v27, %v245_v26 }
  0xee   :  { %492 = vmatmul.mubr.msk.bf16.vlgmr.msra.gmra.mrb[4].mxu1 %vm69_vm1, %v517_v19  ;;  %484 = vmatmul.mubr.msk.bf16.vlgmr.msra.gmra.mrb[8].mxu0 %vm147_vm2, %v247_v28 }
  0xef   :  { %496 = vmatpush3.bf16.msra.mxu1 %v512_v3  ;;  %503 = vmatprep.mubr.msk.bf16.mxu1 %vm519_vm0, %v518_v0 }
  0xf0   :  { %497 = vmatprep.subr.bf16.mxu1 %v518_v0 }
  0xf3   :  { %498 = vmatpush3.bf16.msra.mxu1 %v513_v5 }
  0xf4   :  { %499 = vmatprep.subr.bf16.mxu1 %v518_v0 }
  0xf7   :  { %500 = vmatpush3.bf16.msra.mxu1 %v514_v6 }
  0xf8   :  { %501 = vmatprep.subr.bf16.mxu1 %v518_v0 }
  0xfb   :  { %502 = vmatpush3.bf16.msra.mxu1 %v515_v7 }
 0x1b9   :  { %v185_v30 = vpop.f32.mrb[0].mxu1 }
 0x1ba   :  { %v186_v31 = vadd.f32 %v411_v29, %v185_v30  ;;  %v465_v32 = vpop.f32.mrb[1].mxu1 }
 0x1bb   :  { %v188_v33 = vpop.f32.mrb[2].mxu1 }
 0x1bc   :  { %192 = vst [vmem:[%s664_s7] sm:$0xff] %v186_v31  ;;  %v189_v34 = vadd.f32 %v411_v29, %v188_v33  ;;  %v466_v35 = vpop.f32.mrb[3].mxu1 }
 0x1be   :  { %193 = vst [vmem:[%s664_s7 + $0x8] sm:$0xff] %v189_v34 }
 0x1c1   :  { %v338_v36 = vpop.f32.mrb[4].mxu1  ;;  %v285_v45 = vpop.f32.mrb[8].mxu0 }
 0x1c2   :  { %v339_v37 = vadd.f32 %v406_v9, %v338_v36  ;;  %v493_v38 = vpop.f32.mrb[5].mxu1  ;;  %v286_v46 = vadd.f32 %v411_v29, %v285_v45  ;;  %v485_v47 = vpop.f32.mrb[9].mxu0 }
 0x1c3   :  { %v341_v39 = vpop.f32.mrb[6].mxu1  ;;  %v288_v48 = vpop.f32.mrb[10].mxu0 }
 0x1c4   :  { %v342_v40 = vadd.f32 %v406_v9, %v341_v39  ;;  %v494_v41 = vpop.f32.mrb[7].mxu1  ;;  %v345_v42 = vmax.f32 %v339_v37, 0.0  ;;  %292 = vst [vmem:[%s665_s8] sm:$0xff] %v286_v46  ;;  %v289_v49 = vadd.f32 %v411_v29, %v288_v48  ;;  %v486_v50 = vpop.f32.mrb[11].mxu0 }
 0x1c6   :  { %v346_v43 = vmax.f32 %v342_v40, 0.0  ;;  %293 = vst [vmem:[%s665_s8 + $0x8] sm:$0xff] %v289_v49 }
 0x1c8   :  { %v347_v44 = vpack.c.bf16 %v346_v43, %v345_v42 }
 0x1ca   :  { %504 = vmatmul.mubr.msk.bf16.vlgmr.msra.gmra.mrb[8].mxu1 %vm147_vm2, %v347_v44 }
 0x29d   :  { %v385_v51 = vpop.f32.mrb[8].mxu1 }
 0x29e   :  { %v386_v52 = vadd.f32 %v411_v29, %v385_v51  ;;  %v505_v53 = vpop.f32.mrb[9].mxu1 }
 0x29f   :  { %v388_v54 = vpop.f32.mrb[10].mxu1 }
 0x2a0   :  { %392 = vst [vmem:[%s666_s9] sm:$0xff] %v386_v52  ;;  %v389_v55 = vadd.f32 %v411_v29, %v388_v54  ;;  %v506_v56 = vpop.f32.mrb[11].mxu1 }
 0x2a2   :  { %393 = vst [vmem:[%s666_s9 + $0x8] sm:$0xff] %v389_v55 }

</bundles_post_ra>
